<compile_context>
chip_gen: v6e
topology: v6e:2x2x1
jax: 0.10.0
libtpu: 0.0.40
codegen_flags: <defaults>
</compile_context>

<pallas_src>
import functools

import jax
import jax.numpy as jnp
from jax.experimental import pallas as pl
from jax.experimental.pallas import tpu as pltpu


def mlp_kernel(x_ref,
               w1_ref, b1_ref,
               w2_ref, b2_ref,
               w3_ref, b3_ref,
               w4_ref, b4_ref,
               w5_ref, b5_ref,
               o_ref,
               *, matmul_dtype):
    x = x_ref[...]                                               # (1, TB) f32

    # Layer 1: Linear(1, 128). Contraction dim == 1, so express it as a VPU
    # broadcast outer product (128,1)*(1,TB) instead of a degenerate MXU
    # matmul.  Bias + ReLU in f32, then a single cast to the MXU operand
    # dtype (halves the biggest intermediate when bf16).
    h = jnp.maximum(w1_ref[...] * x + b1_ref[...], 0.0)         # (128, TB) f32
    h = h.astype(matmul_dtype)

    def dense_relu(w_ref, b_ref, h):
        # (out,in) @ (in,TB) on the MXU; N = TB stays lane-dense and full.
        # Weights were pre-cast to matmul_dtype in the wrapper; accumulation
        # stays f32 via preferred_element_type.
        acc = jnp.dot(w_ref[...], h, preferred_element_type=jnp.float32)
        return jnp.maximum(acc + b_ref[...], 0.0).astype(matmul_dtype)

    h = dense_relu(w2_ref, b2_ref, h)                            # (64, TB)
    h = dense_relu(w3_ref, b3_ref, h)                            # (32, TB)
    h = dense_relu(w4_ref, b4_ref, h)                            # (8,  TB)

    # Layer 5: Linear(8, 1). Output width == 1 -> sublane reduce (XLU) instead
    # of an M=1 matmul. w5 is f32, so the product promotes to f32. No ReLU.
    o_ref[...] = (jnp.sum(w5_ref[...] * h, axis=0, keepdims=True)
                  + b5_ref[...])                                 # (1, TB) f32


def _round_up(n, m):
    return ((n + m - 1) // m) * m


def _pick_tile(B, tile_b):
    """Auto batch-tile: big enough to amortize the ~0.35 us per-grid-step
    overhead, capped at 4096 (safe within the 32 MiB scoped VMEM on all
    generations, including v7x's 64 MiB physical VMEM), and sized so that
    realistic batches produce >= 2 grid steps (v7x megacore)."""
    if tile_b is not None:
        return tile_b
    half = max((B + 1) // 2, 1)
    target = min(4096, _round_up(half, 256))
    # Never request a block wider than the (lane-rounded) batch itself.
    return max(128, min(target, _round_up(B, 128)))


def mlp_forward(x, params, *, tile_b=None, matmul_dtype=jnp.bfloat16):
    """x: (B, 1) f32. params: (w1, b1, ..., w5, b5) as produced by init_params.

    tile_b: batch tile on the lane axis (multiple of 128; multiples of 256
      fill full MXU rows on v6e/v7x). None -> auto (up to 4096).
    matmul_dtype: jnp.bfloat16 (default; fast MXU path, f32 accumulation) or
      jnp.float32 (exact parity with the PyTorch f32 reference).
    """
    B = x.shape[0]
    x_row = x.reshape(1, B).astype(jnp.float32)

    tb = _pick_tile(B, tile_b)
    n_tiles = pl.cdiv(B, tb)

    # Pre-cast the dense (MXU) weights once in the wrapper; keep the
    # degenerate layer-1/layer-5 weights and all biases in f32.
    w1, b1, w2, b2, w3, b3, w4, b4, w5, b5 = params
    md = matmul_dtype
    kparams = (w1, b1,
               w2.astype(md), b2,
               w3.astype(md), b3,
               w4.astype(md), b4,
               w5, b5)

    x_spec = pl.BlockSpec((1, tb), lambda i: (0, i))
    # Whole-array blocks with a constant index_map: the ~42 KiB of parameters
    # are DMA'd once and stay resident in VMEM across all grid steps.
    param_specs = [pl.BlockSpec(p.shape, lambda i: (0, 0)) for p in kparams]
    out_spec = pl.BlockSpec((1, tb), lambda i: (0, i))

    flops_per_sample = 2 * (1 * 128 + 128 * 64 + 64 * 32 + 32 * 8 + 8 * 1)
    param_bytes = sum(int(p.size) * p.dtype.itemsize for p in kparams)
    cost = pl.CostEstimate(flops=flops_per_sample * B,
                           transcendentals=0,
                           bytes_accessed=8 * B + param_bytes)

    out = pl.pallas_call(
        functools.partial(mlp_kernel, matmul_dtype=md),
        out_shape=jax.ShapeDtypeStruct((1, B), jnp.float32),
        grid_spec=pltpu.PrefetchScalarGridSpec(
            num_scalar_prefetch=0,
            grid=(n_tiles,),
            in_specs=[x_spec] + param_specs,
            out_specs=out_spec,
        ),
        compiler_params=pltpu.CompilerParams(
            # Batch axis is embarrassingly parallel -> megacore sharding
            # across v7x's two TensorCores; harmless on v5e/v6e.
            dimension_semantics=("parallel",),
            vmem_limit_bytes=32 * 1024 * 1024,
        ),
        cost_estimate=cost,
    )(x_row, *kparams)

    return out.reshape(B, 1)


def init_params(key):
    """Deterministic init matching PyTorch nn.Linear default:
    U(-1/sqrt(fan_in), 1/sqrt(fan_in)) for both weight and bias.
    Weights stored as (out, in); biases as (out, 1) columns."""
    dims = [(1, 128), (128, 64), (64, 32), (32, 8), (8, 1)]
    params = []
    for fan_in, fan_out in dims:
        key, kw, kb = jax.random.split(key, 3)
        bound = 1.0 / jnp.sqrt(float(fan_in))
        w = jax.random.uniform(kw, (fan_out, fan_in), jnp.float32, -bound, bound)
        b = jax.random.uniform(kb, (fan_out, 1), jnp.float32, -bound, bound)
        params += [w, b]
    # Layer 5 weight (1, 8) -> (8, 1) column so the kernel's sublane reduce works.
    params[8] = params[8].reshape(8, 1)
    return tuple(params)


def reference_forward(x, params):
    w1, b1, w2, b2, w3, b3, w4, b4, w5_col, b5 = params
    h = jnp.maximum(x @ w1.T + b1.T, 0.0)
    h = jnp.maximum(h @ w2.T + b2.T, 0.0)
    h = jnp.maximum(h @ w3.T + b3.T, 0.0)
    h = jnp.maximum(h @ w4.T + b4.T, 0.0)
    return h @ w5_col + b5.T


if __name__ == "__main__":
    key = jax.random.PRNGKey(0)
    key, kx = jax.random.split(key)

    params = init_params(key)

    # Small-batch sanity check (same usage shape as the original module).
    batch = 8
    x = jax.random.uniform(kx, (batch, 1), jnp.float32, -1.0, 1.0)
    ref = reference_forward(x, params)

    # Exact f32 MXU path.
    out_f32 = jax.block_until_ready(
        mlp_forward(x, params, matmul_dtype=jnp.float32))
    assert out_f32.shape == (batch, 1), out_f32.shape
    assert jnp.allclose(out_f32, ref, atol=1e-5, rtol=1e-5)

    # Default bf16-operand MXU path (f32 accumulation), looser check.
    out_bf = jax.block_until_ready(mlp_forward(x, params))
    assert out_bf.shape == (batch, 1), out_bf.shape
    assert jnp.allclose(out_bf, ref, atol=5e-2, rtol=5e-2)

    # Non-multiple batch exercising the multi-tile grid + partial last block.
    key, kx2 = jax.random.split(key)
    x2 = jax.random.uniform(kx2, (1573, 1), jnp.float32, -1.0, 1.0)
    ref2 = reference_forward(x2, params)

    out2 = jax.block_until_ready(
        mlp_forward(x2, params, matmul_dtype=jnp.float32))
    assert out2.shape == (1573, 1), out2.shape
    assert jnp.allclose(out2, ref2, atol=1e-5, rtol=1e-5)

    out3 = jax.block_until_ready(mlp_forward(x2, params))
    assert jnp.allclose(out3, ref2, atol=5e-2, rtol=5e-2)

    print("KERNEL_OK")
</pallas_src>

<mosaic_0001>
module attributes {stable_mosaic.version = 11 : i64} {
  func.func @mlp_kernel(%arg0: i32, %arg1: memref<1x128xf32, #tpu.memory_space<vmem>>, %arg2: memref<128x1xf32, #tpu.memory_space<vmem>>, %arg3: memref<128x1xf32, #tpu.memory_space<vmem>>, %arg4: memref<64x128xf32, #tpu.memory_space<vmem>>, %arg5: memref<64x1xf32, #tpu.memory_space<vmem>>, %arg6: memref<32x64xf32, #tpu.memory_space<vmem>>, %arg7: memref<32x1xf32, #tpu.memory_space<vmem>>, %arg8: memref<8x32xf32, #tpu.memory_space<vmem>>, %arg9: memref<8x1xf32, #tpu.memory_space<vmem>>, %arg10: memref<8x1xf32, #tpu.memory_space<vmem>>, %arg11: memref<1x1xf32, #tpu.memory_space<vmem>>, %arg12: memref<1x128xf32, #tpu.memory_space<vmem>>) attributes {dimension_semantics = [#tpu.dimension_semantics<parallel>], iteration_bounds = array<i64: 1>, scalar_prefetch = 0 : i64, scratch_operands = 0 : i64, tpu.core_type = #tpu.core_type<tc>, window_params = [{transform_indices = @transform_0, window_bounds = array<i64: 1, 128>}, {pipeline_mode = #tpu.pipeline_mode<synchronous>, transform_indices = @transform_1, window_bounds = array<i64: 128, 1>}, {pipeline_mode = #tpu.pipeline_mode<synchronous>, transform_indices = @transform_2, window_bounds = array<i64: 128, 1>}, {pipeline_mode = #tpu.pipeline_mode<synchronous>, transform_indices = @transform_3, window_bounds = array<i64: 64, 128>}, {pipeline_mode = #tpu.pipeline_mode<synchronous>, transform_indices = @transform_4, window_bounds = array<i64: 64, 1>}, {pipeline_mode = #tpu.pipeline_mode<synchronous>, transform_indices = @transform_5, window_bounds = array<i64: 32, 64>}, {pipeline_mode = #tpu.pipeline_mode<synchronous>, transform_indices = @transform_6, window_bounds = array<i64: 32, 1>}, {pipeline_mode = #tpu.pipeline_mode<synchronous>, transform_indices = @transform_7, window_bounds = array<i64: 8, 32>}, {pipeline_mode = #tpu.pipeline_mode<synchronous>, transform_indices = @transform_8, window_bounds = array<i64: 8, 1>}, {pipeline_mode = #tpu.pipeline_mode<synchronous>, transform_indices = @transform_9, window_bounds = array<i64: 8, 1>}, {pipeline_mode = #tpu.pipeline_mode<synchronous>, transform_indices = @transform_10, window_bounds = array<i64: 1, 1>}, {transform_indices = @transform_11, window_bounds = array<i64: 1, 128>}]} {
    %c0 = arith.constant 0 : index
    %c0_0 = arith.constant 0 : index
    %0 = vector.load %arg1[%c0, %c0_0] : memref<1x128xf32, #tpu.memory_space<vmem>>, vector<1x128xf32>
    %c0_1 = arith.constant 0 : index
    %c0_2 = arith.constant 0 : index
    %1 = vector.load %arg2[%c0_1, %c0_2] : memref<128x1xf32, #tpu.memory_space<vmem>>, vector<128x1xf32>
    %2 = vector.broadcast %1 : vector<128x1xf32> to vector<128x128xf32>
    %3 = vector.broadcast %0 : vector<1x128xf32> to vector<128x128xf32>
    %4 = arith.mulf %2, %3 : vector<128x128xf32>
    %c0_3 = arith.constant 0 : index
    %c0_4 = arith.constant 0 : index
    %5 = vector.load %arg3[%c0_3, %c0_4] : memref<128x1xf32, #tpu.memory_space<vmem>>, vector<128x1xf32>
    %6 = vector.broadcast %5 : vector<128x1xf32> to vector<128x128xf32>
    %7 = arith.addf %4, %6 : vector<128x128xf32>
    %cst = arith.constant 0.000000e+00 : f32
    %8 = vector.broadcast %cst : f32 to vector<128x128xf32>
    %9 = arith.maximumf %7, %8 : vector<128x128xf32>
    %c0_5 = arith.constant 0 : index
    %c0_6 = arith.constant 0 : index
    %10 = vector.load %arg4[%c0_5, %c0_6] : memref<64x128xf32, #tpu.memory_space<vmem>>, vector<64x128xf32>
    %cst_7 = arith.constant dense<0.000000e+00> : vector<64x128xf32>
    %11 = tpu.matmul %10, %9, %cst_7 {dimension_numbers = #tpu.dot_dimension_numbers<[1], [0], [0], [1], [0, 0, 1, 1], [], []>} : vector<64x128xf32>, vector<128x128xf32>, vector<64x128xf32> -> vector<64x128xf32>
    %c0_8 = arith.constant 0 : index
    %c0_9 = arith.constant 0 : index
    %12 = vector.load %arg5[%c0_8, %c0_9] : memref<64x1xf32, #tpu.memory_space<vmem>>, vector<64x1xf32>
    %13 = vector.broadcast %12 : vector<64x1xf32> to vector<64x128xf32>
    %14 = arith.addf %11, %13 : vector<64x128xf32>
    %cst_10 = arith.constant 0.000000e+00 : f32
    %15 = vector.broadcast %cst_10 : f32 to vector<64x128xf32>
    %16 = arith.maximumf %14, %15 : vector<64x128xf32>
    %c0_11 = arith.constant 0 : index
    %c0_12 = arith.constant 0 : index
    %17 = vector.load %arg6[%c0_11, %c0_12] : memref<32x64xf32, #tpu.memory_space<vmem>>, vector<32x64xf32>
    %cst_13 = arith.constant dense<0.000000e+00> : vector<32x128xf32>
    %18 = tpu.matmul %17, %16, %cst_13 {dimension_numbers = #tpu.dot_dimension_numbers<[1], [0], [0], [1], [0, 0, 1, 1], [], []>} : vector<32x64xf32>, vector<64x128xf32>, vector<32x128xf32> -> vector<32x128xf32>
    %c0_14 = arith.constant 0 : index
    %c0_15 = arith.constant 0 : index
    %19 = vector.load %arg7[%c0_14, %c0_15] : memref<32x1xf32, #tpu.memory_space<vmem>>, vector<32x1xf32>
    %20 = vector.broadcast %19 : vector<32x1xf32> to vector<32x128xf32>
    %21 = arith.addf %18, %20 : vector<32x128xf32>
    %cst_16 = arith.constant 0.000000e+00 : f32
    %22 = vector.broadcast %cst_16 : f32 to vector<32x128xf32>
    %23 = arith.maximumf %21, %22 : vector<32x128xf32>
    %c0_17 = arith.constant 0 : index
    %c0_18 = arith.constant 0 : index
    %24 = vector.load %arg8[%c0_17, %c0_18] : memref<8x32xf32, #tpu.memory_space<vmem>>, vector<8x32xf32>
    %cst_19 = arith.constant dense<0.000000e+00> : vector<8x128xf32>
    %25 = tpu.matmul %24, %23, %cst_19 {dimension_numbers = #tpu.dot_dimension_numbers<[1], [0], [0], [1], [0, 0, 1, 1], [], []>} : vector<8x32xf32>, vector<32x128xf32>, vector<8x128xf32> -> vector<8x128xf32>
    %c0_20 = arith.constant 0 : index
    %c0_21 = arith.constant 0 : index
    %26 = vector.load %arg9[%c0_20, %c0_21] : memref<8x1xf32, #tpu.memory_space<vmem>>, vector<8x1xf32>
    %27 = vector.broadcast %26 : vector<8x1xf32> to vector<8x128xf32>
    %28 = arith.addf %25, %27 : vector<8x128xf32>
    %cst_22 = arith.constant 0.000000e+00 : f32
    %29 = vector.broadcast %cst_22 : f32 to vector<8x128xf32>
    %30 = arith.maximumf %28, %29 : vector<8x128xf32>
    %c0_23 = arith.constant 0 : index
    %c0_24 = arith.constant 0 : index
    %31 = vector.load %arg10[%c0_23, %c0_24] : memref<8x1xf32, #tpu.memory_space<vmem>>, vector<8x1xf32>
    %32 = vector.broadcast %31 : vector<8x1xf32> to vector<8x128xf32>
    %33 = arith.mulf %32, %30 : vector<8x128xf32>
    %cst_25 = arith.constant dense<0.000000e+00> : vector<128xf32>
    %34 = vector.multi_reduction <add>, %33, %cst_25 [0] : vector<8x128xf32> to vector<128xf32>
    %35 = vector.shape_cast %34 : vector<128xf32> to vector<1x128xf32>
    %c0_26 = arith.constant 0 : index
    %c0_27 = arith.constant 0 : index
    %36 = vector.load %arg11[%c0_26, %c0_27] : memref<1x1xf32, #tpu.memory_space<vmem>>, vector<1x1xf32>
    %37 = vector.broadcast %36 : vector<1x1xf32> to vector<1x128xf32>
    %38 = arith.addf %35, %37 : vector<1x128xf32>
    %c0_28 = arith.constant 0 : index
    %c0_29 = arith.constant 0 : index
    %39 = vector.load %arg12[%c0_28, %c0_29] : memref<1x128xf32, #tpu.memory_space<vmem>>, vector<1x128xf32>
    tpu.vector_store %arg12[%c0_28, %c0_29], %38 {strides = array<i32>} : memref<1x128xf32, #tpu.memory_space<vmem>>, vector<1x128xf32>,
    return
  }
  func.func @transform_0(%arg0: i32) -> (i32, i32) {
    %c0_i32 = arith.constant 0 : i32
    %c0_i32_0 = arith.constant 0 : i32
    return %c0_i32, %arg0 : i32, i32
  }
  func.func @transform_1(%arg0: i32) -> (i32, i32) {
    %c0_i32 = arith.constant 0 : i32
    %c0_i32_0 = arith.constant 0 : i32
    %c0_i32_1 = arith.constant 0 : i32
    return %c0_i32, %c0_i32_0 : i32, i32
  }
  func.func @transform_2(%arg0: i32) -> (i32, i32) {
    %c0_i32 = arith.constant 0 : i32
    %c0_i32_0 = arith.constant 0 : i32
    %c0_i32_1 = arith.constant 0 : i32
    return %c0_i32, %c0_i32_0 : i32, i32
  }
  func.func @transform_3(%arg0: i32) -> (i32, i32) {
    %c0_i32 = arith.constant 0 : i32
    %c0_i32_0 = arith.constant 0 : i32
    %c0_i32_1 = arith.constant 0 : i32
    return %c0_i32, %c0_i32_0 : i32, i32
  }
  func.func @transform_4(%arg0: i32) -> (i32, i32) {
    %c0_i32 = arith.constant 0 : i32
    %c0_i32_0 = arith.constant 0 : i32
    %c0_i32_1 = arith.constant 0 : i32
    return %c0_i32, %c0_i32_0 : i32, i32
  }
  func.func @transform_5(%arg0: i32) -> (i32, i32) {
    %c0_i32 = arith.constant 0 : i32
    %c0_i32_0 = arith.constant 0 : i32
    %c0_i32_1 = arith.constant 0 : i32
    return %c0_i32, %c0_i32_0 : i32, i32
  }
  func.func @transform_6(%arg0: i32) -> (i32, i32) {
    %c0_i32 = arith.constant 0 : i32
    %c0_i32_0 = arith.constant 0 : i32
    %c0_i32_1 = arith.constant 0 : i32
    return %c0_i32, %c0_i32_0 : i32, i32
  }
  func.func @transform_7(%arg0: i32) -> (i32, i32) {
    %c0_i32 = arith.constant 0 : i32
    %c0_i32_0 = arith.constant 0 : i32
    %c0_i32_1 = arith.constant 0 : i32
    return %c0_i32, %c0_i32_0 : i32, i32
  }
  func.func @transform_8(%arg0: i32) -> (i32, i32) {
    %c0_i32 = arith.constant 0 : i32
    %c0_i32_0 = arith.constant 0 : i32
    %c0_i32_1 = arith.constant 0 : i32
    return %c0_i32, %c0_i32_0 : i32, i32
  }
  func.func @transform_9(%arg0: i32) -> (i32, i32) {
    %c0_i32 = arith.constant 0 : i32
    %c0_i32_0 = arith.constant 0 : i32
    %c0_i32_1 = arith.constant 0 : i32
    return %c0_i32, %c0_i32_0 : i32, i32
  }
  func.func @transform_10(%arg0: i32) -> (i32, i32) {
    %c0_i32 = arith.constant 0 : i32
    %c0_i32_0 = arith.constant 0 : i32
    %c0_i32_1 = arith.constant 0 : i32
    return %c0_i32, %c0_i32_0 : i32, i32
  }
  func.func @transform_11(%arg0: i32) -> (i32, i32) {
    %c0_i32 = arith.constant 0 : i32
    %c0_i32_0 = arith.constant 0 : i32
    return %c0_i32, %arg0 : i32, i32
  }
}

</mosaic_0001>

<bundles_post_ra>
// kernel: tpu_custom_call.1
= control target key start
LH: loop header
LB: loop body
LE: loop exit
PB: predicated region body
PF: predicated region fallthrough
CT: control target
= control target key end

     0   :  { %s1132_s0 = inlined_call_operand.vmem [shape: f32[1,8], index: 0, kind: input, shape index: {}]   ;;  %s1133_s1 = inlined_call_operand.vmem [shape: f32[128,1], index: 1, kind: input, shape index: {}]   ;;  %s1134_s2 = inlined_call_operand.vmem [shape: f32[128,1], index: 2, kind: input, shape index: {}]   ;;  %s1135_s3 = inlined_call_operand.vmem [shape: f32[64,128], index: 3, kind: input, shape index: {}]   ;;  %s1136_s4 = inlined_call_operand.vmem [shape: f32[64,1], index: 4, kind: input, shape index: {}]   ;;  %s1137_s5 = inlined_call_operand.vmem [shape: f32[32,64], index: 5, kind: input, shape index: {}]   ;;  %s1138_s6 = inlined_call_operand.vmem [shape: f32[32,1], index: 6, kind: input, shape index: {}]   ;;  %s1139_s7 = inlined_call_operand.vmem [shape: f32[8,32], index: 7, kind: input, shape index: {}]   ;;  %s1140_s8 = inlined_call_operand.vmem [shape: f32[8,1], index: 8, kind: input, shape index: {}]   ;;  %s1141_s9 = inlined_call_operand.vmem [shape: f32[8,1], index: 9, kind: input, shape index: {}]   ;;  %s1142_s10 = inlined_call_operand.<no memory space> [shape: f32[1,1], index: 10, kind: input, shape index: {}]   ;;  %s1143_s11 = inlined_call_operand.hbm [shape: f32[1,8], index: 11, kind: output, shape index: {}]  }
   0x1   :  { %v16_v0 = vstv %s1142_s10 }
   0x2   :  { %17 = vst [vmem:[#allocation2] sm:$0x1] %v16_v0 }
   0x3   :  { %v175_v1 = vld [vmem:[%s1134_s2 + $0x78] sm:$0xff]  ;;  %v860_v3 = vmov 0   ;;  %v56_v4 = vld [vmem:[%s1133_s1 + $0x70] sm:$0xff]  ;;  %v55_v5 = vld [vmem:[%s1133_s1 + $0x68] sm:$0xff] }
   0x4   :  { %v57_v2 = vld [vmem:[%s1133_s1 + $0x78] sm:$0xff]  ;;  %837 = vset.pattern.permute.xlu1 %v860_v3  ;;  %836 = vset.pattern.permute.xlu0 %v860_v3  ;;  %v174_v6 = vld [vmem:[%s1134_s2 + $0x70] sm:$0xff]  ;;  %v54_v7 = vld [vmem:[%s1133_s1 + $0x60] sm:$0xff] }
   0x5   :  { %253 = vperm.xlu1 %837, %v175_v1   ;;  %135 = vperm.xlu0 %836, %v57_v2   ;;  %v173_v8 = vld [vmem:[%s1134_s2 + $0x68] sm:$0xff]  ;;  %v53_v9 = vld [vmem:[%s1133_s1 + $0x58] sm:$0xff]  ;;  %v172_v10 = vld [vmem:[%s1134_s2 + $0x60] sm:$0xff] }
   0x6   :  { %v52_v11 = vld [vmem:[%s1133_s1 + $0x50] sm:$0xff] }
   0x9   :  { %130 = vperm.xlu0 %836, %v56_v4   ;;  %125 = vperm.xlu1 %837, %v55_v5  }
   0xd   :  { %248 = vperm.xlu0 %836, %v174_v6   ;;  %120 = vperm.xlu1 %837, %v54_v7  }
  0x11   :  { %243 = vperm.xlu0 %836, %v173_v8   ;;  %115 = vperm.xlu1 %837, %v53_v9  }
  0x12   :  { %18 = vsyncpa [#allocation4], 0  ;;  %v171_v12 = vld [vmem:[%s1134_s2 + $0x58] sm:$0xff]  ;;  %v51_v13 = vld [vmem:[%s1133_s1 + $0x48] sm:$0xff]  ;;  %vm485_vm0 = vcmask 523264   ;;  %vm862_vm1 = vmmov 0  }
  0x13   :  { %v170_v14 = vld [vmem:[%s1134_s2 + $0x50] sm:$0xff]  ;;  %v50_v15 = vld [vmem:[%s1133_s1 + $0x40] sm:$0xff]  ;;  %v169_v16 = vld [vmem:[%s1134_s2 + $0x48] sm:$0xff]  ;;  %vm594_vm2 = vcmask 261120  }
  0x14   :  { %v49_v17 = vld [vmem:[%s1133_s1 + $0x38] sm:$0xff]  ;;  %v168_v18 = vld [vmem:[%s1134_s2 + $0x40] sm:$0xff]  ;;  %v48_v19 = vld [vmem:[%s1133_s1 + $0x30] sm:$0xff] }
  0x15   :  { %238 = vperm.xlu0 %836, %v172_v10   ;;  %110 = vperm.xlu1 %837, %v52_v11   ;;  %v167_v20 = vld [vmem:[%s1134_s2 + $0x38] sm:$0xff]  ;;  %v47_v21 = vld [vmem:[%s1133_s1 + $0x28] sm:$0xff]  ;;  %v166_v22 = vld [vmem:[%s1134_s2 + $0x30] sm:$0xff] }
  0x16   :  { %v46_v23 = vld [vmem:[%s1133_s1 + $0x20] sm:$0xff]  ;;  %v165_v24 = vld [vmem:[%s1134_s2 + $0x28] sm:$0xff]  ;;  %v45_v25 = vld [vmem:[%s1133_s1 + $0x18] sm:$0xff] }
  0x17   :  { %v164_v26 = vld [vmem:[%s1134_s2 + $0x20] sm:$0xff]  ;;  %v44_v27 = vld [vmem:[%s1133_s1 + $0x10] sm:$0xff]  ;;  %v163_v28 = vld [vmem:[%s1134_s2 + $0x18] sm:$0xff] }
  0x18   :  { %v43_v29 = vld [vmem:[%s1133_s1 + $0x8] sm:$0xff]  ;;  %v162_v30 = vld [vmem:[%s1134_s2 + $0x10] sm:$0xff]  ;;  %v42_v31 = vld [vmem:[%s1133_s1] sm:$0xff] }
  0x19   :  { %233 = vperm.xlu0 %836, %v171_v12   ;;  %105 = vperm.xlu1 %837, %v51_v13   ;;  %v161_v32 = vld [vmem:[%s1134_s2 + $0x8] sm:$0xff]  ;;  %v160_v33 = vld [vmem:[%s1134_s2] sm:$0xff]  ;;  %v303_v34 = vld [vmem:[%s1136_s4 + $0x38] sm:$0xff] }
  0x1a   :  { %v302_v35 = vld [vmem:[%s1136_s4 + $0x30] sm:$0xff]  ;;  %v288_v36 = vld [vmem:[%s1135_s3] sm:$0xff]  ;;  %v301_v37 = vld [vmem:[%s1136_s4 + $0x28] sm:$0xff] }
  0x1b   :  { %787 = vmatprep.mubr.f32.mxu0 %v288_v36  ;;  %v300_v38 = vld [vmem:[%s1136_s4 + $0x20] sm:$0xff]  ;;  %v299_v39 = vld [vmem:[%s1136_s4 + $0x18] sm:$0xff]  ;;  %v298_v40 = vld [vmem:[%s1136_s4 + $0x10] sm:$0xff] }
  0x1c   :  { %v297_v41 = vld [vmem:[%s1136_s4 + $0x8] sm:$0xff]  ;;  %v296_v42 = vld [vmem:[%s1136_s4] sm:$0xff]  ;;  %v464_v43 = vld [vmem:[%s1138_s6 + $0x18] sm:$0xff] }
  0x1d   :  { %228 = vperm.xlu0 %836, %v170_v14   ;;  %100 = vperm.xlu1 %837, %v50_v15   ;;  %v463_v44 = vld [vmem:[%s1138_s6 + $0x10] sm:$0xff]  ;;  %v462_v45 = vld [vmem:[%s1138_s6 + $0x8] sm:$0xff]  ;;  %v461_v46 = vld [vmem:[%s1138_s6] sm:$0xff] }
  0x1e   :  { %v588_v47 = vld [vmem:[%s1140_s8] sm:$0xff] }
  0x1f   :  { %v669_v48 = vld [vmem:[%s1141_s9] sm:$0xff] }
  0x20   :  { %v682_v49 = vld [vmem:[#allocation2] sm:$0x1] }
  0x21   :  { %223 = vperm.xlu0 %836, %v169_v16   ;;  %95 = vperm.xlu1 %837, %v49_v17   ;;  %v1071_v50 = vld [vmem:[%s1132_s0] ss:$0 sm:$0xff] }
  0x25   :  { %218 = vperm.xlu0 %836, %v168_v18   ;;  %90 = vperm.xlu1 %837, %v48_v19  }
  0x29   :  { %213 = vperm.xlu0 %836, %v167_v20   ;;  %85 = vperm.xlu1 %837, %v47_v21  }
  0x2d   :  { %208 = vperm.xlu0 %836, %v166_v22   ;;  %80 = vperm.xlu1 %837, %v46_v23  }
  0x31   :  { %203 = vperm.xlu0 %836, %v165_v24   ;;  %75 = vperm.xlu1 %837, %v45_v25  }
  0x35   :  { %198 = vperm.xlu0 %836, %v164_v26   ;;  %70 = vperm.xlu1 %837, %v44_v27  }
  0x39   :  { %193 = vperm.xlu0 %836, %v163_v28   ;;  %65 = vperm.xlu1 %837, %v43_v29  }
  0x3d   :  { %188 = vperm.xlu0 %836, %v162_v30   ;;  %60 = vperm.xlu1 %837, %v42_v31  }
  0x41   :  { %183 = vperm.xlu0 %836, %v161_v32   ;;  %178 = vperm.xlu1 %837, %v160_v33  }
  0x45   :  { %341 = vperm.xlu0 %836, %v303_v34   ;;  %336 = vperm.xlu1 %837, %v302_v35  }
  0x49   :  { %331 = vperm.xlu0 %836, %v301_v37   ;;  %326 = vperm.xlu1 %837, %v300_v38  }
  0x4d   :  { %321 = vperm.xlu0 %836, %v299_v39   ;;  %316 = vperm.xlu1 %837, %v298_v40  }
  0x51   :  { %311 = vperm.xlu0 %836, %v297_v41   ;;  %306 = vperm.xlu1 %837, %v296_v42  }
  0x55   :  { %482 = vperm.xlu0 %836, %v464_v43   ;;  %477 = vperm.xlu1 %837, %v463_v44  }
  0x59   :  { %472 = vperm.xlu0 %836, %v462_v45   ;;  %467 = vperm.xlu1 %837, %v461_v46  }
  0x5d   :  { %591 = vperm.xlu0 %836, %v588_v47   ;;  %672 = vperm.xlu1 %837, %v669_v48  }
  0x61   :  { %685 = vperm.xlu0 %836, %v682_v49  }
  0x80   :  { %v254_v51 = vpop.permute.xlu1 %253  ;;  %v136_v52 = vpop.permute.xlu0 %135 }
  0x81   :  { %v159_v53 = vmul.f32 %v1071_v50, %v136_v52 }
  0x83   :  { %v271_v54 = vadd.f32 %v254_v51, %v159_v53 }
  0x84   :  { %v131_v55 = vpop.permute.xlu0 %130  ;;  %v126_v56 = vpop.permute.xlu1 %125 }
  0x85   :  { %v287_v57 = vmax.f32 %v271_v54, 0.0  ;;  %v158_v58 = vmul.f32 %v1071_v50, %v131_v55  ;;  %v157_v62 = vmul.f32 %v1071_v50, %v126_v56 }
  0x87   :  { %755 = vmatprep.subr.mxu0 %v287_v57 }
  0x88   :  { %v249_v59 = vpop.permute.xlu0 %248  ;;  %v121_v60 = vpop.permute.xlu1 %120  ;;  %756 = vmatpush3.msra.mxu0 %v287_v57 }
  0x89   :  { %v270_v61 = vadd.f32 %v249_v59, %v158_v58  ;;  %v156_v3 = vmul.f32 %v1071_v50, %v121_v60 }
  0x8b   :  { %v286_v63 = vmax.f32 %v270_v61, 0.0 }
  0x8c   :  { %v244_v0 = vpop.permute.xlu0 %243  ;;  %v116_v1 = vpop.permute.xlu1 %115 }
  0x8d   :  { %v269_v2 = vadd.f32 %v244_v0, %v157_v62  ;;  %757 = vmatprep.subr.mxu0 %v286_v63  ;;  %v155_v8 = vmul.f32 %v1071_v50, %v116_v1 }
  0x8e   :  { %758 = vmatpush3.msra.mxu0 %v286_v63 }
  0x8f   :  { %v285_v4 = vmax.f32 %v269_v2, 0.0 }
  0x90   :  { %v239_v5 = vpop.permute.xlu0 %238  ;;  %v111_v6 = vpop.permute.xlu1 %110 }
  0x91   :  { %v268_v7 = vadd.f32 %v239_v5, %v156_v3  ;;  %759 = vmatprep.subr.mxu0 %v285_v4  ;;  %v154_v13 = vmul.f32 %v1071_v50, %v111_v6  ;;  %v290_v5 = vld [vmem:[%s1135_s3 + $0x10] sm:$0xff]  ;;  %v292_v6 = vld [vmem:[%s1135_s3 + $0x20] sm:$0xff] }
  0x92   :  { %760 = vmatpush3.msra.mxu0 %v285_v4  ;;  %v289_v4 = vld [vmem:[%s1135_s3 + $0x8] sm:$0xff] }
  0x93   :  { %v284_v9 = vmax.f32 %v268_v7, 0.0  ;;  %v293_v7 = vld [vmem:[%s1135_s3 + $0x28] sm:$0xff] }
  0x94   :  { %v234_v10 = vpop.permute.xlu0 %233  ;;  %v106_v11 = vpop.permute.xlu1 %105 }
  0x95   :  { %v267_v12 = vadd.f32 %v234_v10, %v155_v8  ;;  %761 = vmatprep.subr.mxu0 %v284_v9  ;;  %v153_v18 = vmul.f32 %v1071_v50, %v106_v11  ;;  %v294_v8 = vld [vmem:[%s1135_s3 + $0x30] sm:$0xff]  ;;  %v457_v10 = vld [vmem:[%s1137_s5] sm:$0xff] }
  0x96   :  { %762 = vmatpush3.msra.mxu0 %v284_v9  ;;  %v295_v9 = vld [vmem:[%s1135_s3 + $0x38] sm:$0xff]  ;;  %815 = vmatprep.mubr.msk.f32.mxu1 %vm485_vm0, %v457_v10 }
  0x97   :  { %v283_v14 = vmax.f32 %v267_v12, 0.0 }
  0x98   :  { %v229_v15 = vpop.permute.xlu0 %228  ;;  %v101_v16 = vpop.permute.xlu1 %100 }
  0x99   :  { %v266_v17 = vadd.f32 %v229_v15, %v154_v13  ;;  %763 = vmatprep.subr.mxu0 %v283_v14  ;;  %v152_v23 = vmul.f32 %v1071_v50, %v101_v16 }
  0x9a   :  { %764 = vmatpush3.msra.mxu0 %v283_v14 }
  0x9b   :  { %v282_v19 = vmax.f32 %v266_v17, 0.0 }
  0x9c   :  { %v224_v20 = vpop.permute.xlu0 %223  ;;  %v96_v21 = vpop.permute.xlu1 %95 }
  0x9d   :  { %v265_v22 = vadd.f32 %v224_v20, %v153_v18  ;;  %765 = vmatprep.subr.mxu0 %v282_v19  ;;  %v151_v28 = vmul.f32 %v1071_v50, %v96_v21 }
  0x9e   :  { %766 = vmatpush3.msra.mxu0 %v282_v19 }
  0x9f   :  { %v281_v24 = vmax.f32 %v265_v22, 0.0 }
  0xa0   :  { %v219_v25 = vpop.permute.xlu0 %218  ;;  %v91_v26 = vpop.permute.xlu1 %90 }
  0xa1   :  { %v264_v27 = vadd.f32 %v219_v25, %v152_v23  ;;  %767 = vmatprep.subr.mxu0 %v281_v24  ;;  %v150_v33 = vmul.f32 %v1071_v50, %v91_v26 }
  0xa2   :  { %768 = vmatpush3.msra.mxu0 %v281_v24 }
  0xa3   :  { %v280_v29 = vmax.f32 %v264_v27, 0.0 }
  0xa4   :  { %v214_v30 = vpop.permute.xlu0 %213  ;;  %v86_v31 = vpop.permute.xlu1 %85 }
  0xa5   :  { %v263_v32 = vadd.f32 %v214_v30, %v151_v28  ;;  %769 = vmatprep.subr.mxu0 %v280_v29  ;;  %v149_v38 = vmul.f32 %v1071_v50, %v86_v31 }
  0xa6   :  { %770 = vmatpush3.msra.mxu0 %v280_v29 }
  0xa7   :  { %v279_v34 = vmax.f32 %v263_v32, 0.0 }
  0xa8   :  { %v209_v35 = vpop.permute.xlu0 %208  ;;  %v81_v36 = vpop.permute.xlu1 %80 }
  0xa9   :  { %v262_v37 = vadd.f32 %v209_v35, %v150_v33  ;;  %771 = vmatprep.subr.mxu0 %v279_v34  ;;  %v148_v43 = vmul.f32 %v1071_v50, %v81_v36 }
  0xaa   :  { %772 = vmatpush3.msra.mxu0 %v279_v34 }
  0xab   :  { %v278_v39 = vmax.f32 %v262_v37, 0.0 }
  0xac   :  { %v204_v40 = vpop.permute.xlu0 %203  ;;  %v76_v41 = vpop.permute.xlu1 %75 }
  0xad   :  { %v261_v42 = vadd.f32 %v204_v40, %v149_v38  ;;  %773 = vmatprep.subr.mxu0 %v278_v39  ;;  %v147_v48 = vmul.f32 %v1071_v50, %v76_v41 }
  0xae   :  { %774 = vmatpush3.msra.mxu0 %v278_v39 }
  0xaf   :  { %v277_v44 = vmax.f32 %v261_v42, 0.0 }
  0xb0   :  { %v199_v45 = vpop.permute.xlu0 %198  ;;  %v71_v46 = vpop.permute.xlu1 %70 }
  0xb1   :  { %v260_v47 = vadd.f32 %v199_v45, %v148_v43  ;;  %775 = vmatprep.subr.mxu0 %v277_v44  ;;  %v146_v54 = vmul.f32 %v1071_v50, %v71_v46  ;;  %v458_v43 = vld [vmem:[%s1137_s5 + $0x8] sm:$0xff]  ;;  %v460_v45 = vld [vmem:[%s1137_s5 + $0x18] sm:$0xff]  ;;  %v861_v46 = vmov 0.0  }
  0xb2   :  { %776 = vmatpush3.msra.mxu0 %v277_v44  ;;  %v459_v44 = vld [vmem:[%s1137_s5 + $0x10] sm:$0xff] }
  0xb3   :  { %v276_v49 = vmax.f32 %v260_v47, 0.0 }
  0xb4   :  { %v194_v51 = vpop.permute.xlu0 %193  ;;  %v66_v52 = vpop.permute.xlu1 %65 }
  0xb5   :  { %v259_v53 = vadd.f32 %v194_v51, %v147_v48  ;;  %777 = vmatprep.subr.mxu0 %v276_v49  ;;  %v145_v59 = vmul.f32 %v1071_v50, %v66_v52 }
  0xb6   :  { %778 = vmatpush3.msra.mxu0 %v276_v49 }
  0xb7   :  { %v275_v55 = vmax.f32 %v259_v53, 0.0 }
  0xb8   :  { %v189_v56 = vpop.permute.xlu0 %188  ;;  %v61_v57 = vpop.permute.xlu1 %60 }
  0xb9   :  { %v258_v58 = vadd.f32 %v189_v56, %v146_v54  ;;  %779 = vmatprep.subr.mxu0 %v275_v55  ;;  %v144_v61 = vmul.f32 %v1071_v50, %v61_v57  ;;  %v291_v50 = vld [vmem:[%s1135_s3 + $0x18] sm:$0xff] }
  0xba   :  { %780 = vmatpush3.msra.mxu0 %v275_v55 }
  0xbb   :  { %v274_v60 = vmax.f32 %v258_v58, 0.0 }
  0xbc   :  { %v184_v62 = vpop.permute.xlu0 %183  ;;  %v179_v63 = vpop.permute.xlu1 %178 }
  0xbd   :  { %v257_v0 = vadd.f32 %v184_v62, %v145_v59  ;;  %v256_v1 = vadd.f32 %v179_v63, %v144_v61  ;;  %781 = vmatprep.subr.mxu0 %v274_v60 }
  0xbe   :  { %782 = vmatpush3.msra.mxu0 %v274_v60 }
  0xbf   :  { %v273_v2 = vmax.f32 %v257_v0, 0.0  ;;  %v272_v3 = vmax.f32 %v256_v1, 0.0  ;;  %v587_v0 = vld [vmem:[%s1139_s7] sm:$0xff]  ;;  %s863_s7 = smov [#allocation3]  }
  0xc0   :  { %v342_v13 = vpop.permute.xlu0 %341  ;;  %v337_v15 = vpop.permute.xlu1 %336  ;;  %s700_s1 = sshll.u32 %s863_s7, 4  ;;  %s701_s1 = int_to_ptr.vmem [resolvable:$true] %s700_s1 }
  0xc1   :  { %783 = vmatprep.subr.mxu0 %v273_v2  ;;  %s838_s26 = scalar_lea.vmem %s701_s1, 16  ;;  %s842_s27 = scalar_lea.vmem %s701_s1, 32 }
  0xc2   :  { %784 = vmatpush3.msra.mxu0 %v273_v2  ;;  %p839_p0 = scmp.ne.s32.totalorder %s701_s1, %s838_s26  ;;  %p843_p1 = scmp.lt.s32.totalorder %s701_s1, %s701_s1 }
  0xc3   :  { %785 = vmatprep.subr.mxu0 %v272_v3  ;;  %p844_p2 = scmp.lt.s32.totalorder %s842_s27, %s838_s26 }
  0xc4   :  { %786 = vmatpush3.msra.mxu0 %v272_v3  ;;  %v332_v18 = vpop.permute.xlu0 %331  ;;  %v327_v20 = vpop.permute.xlu1 %326 }
  0xc5   :  { %788 = vmatmul.mubr.f32.vlgmr.msra.gmra.mxu0 %v289_v4  ;;  %p845_p3 = por %p844_p2, %p843_p1 }
  0xc6   :  { %790 = vmatprep.mubr.f32.mxu0 %v290_v5 }
  0xc7   :  { %p846_p4 = pnand %p845_p3, %p839_p0 }
  0xc8   :  { %v322_v27 = vpop.permute.xlu0 %321  ;;  %v317_v30 = vpop.permute.xlu1 %316 }
  0xc9   :  { %791 = vmatmul.mubr.f32.gmra.mxu0 %v291_v50 }
  0xca   :  { %793 = vmatprep.mubr.f32.mxu0 %v292_v6  ;;  %v688_v6 = vlaneseq }
  0xcc   :  { %v312_v35 = vpop.permute.xlu0 %311  ;;  %v307_v38 = vpop.permute.xlu1 %306 }
  0xcd   :  { %794 = vmatmul.mubr.f32.gmra.mxu0 %v293_v7 }
  0xce   :  { %796 = vmatprep.mubr.f32.mxu0 %v294_v8 }
  0xd0   :  { %v483_v47 = vpop.permute.xlu0 %482  ;;  %v478_v49 = vpop.permute.xlu1 %477 }
  0xd1   :  { %797 = vmatmul.mubr.f32.gmra.mxu0 %v295_v9  ;;  %v689_v9 = vshrl.u32 %v688_v6, 7 }
  0xd4   :  { %v473_v54 = vpop.permute.xlu0 %472  ;;  %v468_v59 = vpop.permute.xlu1 %467 }
  0xd8   :  { %v592_v1 = vpop.permute.xlu0 %591  ;;  %v673_v50 = vpop.permute.xlu1 %672 }
 0x185   :  { %v789_v11 = vpop.f32.mrf.mxu0 }
 0x186   :  { %v416_v36 = vadd.f32 %v789_v11, %v312_v35 }
 0x187   :  { %v410_v12 = vpop.f32.mrf.mxu0 }
 0x188   :  { %v411_v39 = vadd.f32 %v410_v12, %v307_v38  ;;  %v450_v41 = vmax.f32 %v416_v36, 0.0  ;;  %v690_v12 = vsub.s32 0, %v689_v9 }
 0x189   :  { %v792_v14 = vpop.f32.mrf.mxu0 }
 0x18a   :  { %v426_v31 = vadd.f32 %v792_v14, %v322_v27  ;;  %v449_v42 = vmax.f32 %v411_v39, 0.0  ;;  %v686_v14 = vpop.permute.xlu0 %685 }
 0x18b   :  { %v420_v16 = vpop.f32.mrf.mxu0 }
 0x18c   :  { %v421_v33 = vadd.f32 %v420_v16, %v317_v30  ;;  %v452_v37 = vmax.f32 %v426_v31, 0.0  ;;  %v691_v16 = vrot.slane %v686_v14, %v690_v12 }
 0x18d   :  { %v795_v17 = vpop.f32.mrf.mxu0 }
 0x18e   :  { %v436_v24 = vadd.f32 %v795_v17, %v332_v18  ;;  %v451_v40 = vmax.f32 %v421_v33, 0.0 }
 0x18f   :  { %v430_v19 = vpop.f32.mrf.mxu0 }
 0x190   :  { %v431_v28 = vadd.f32 %v430_v19, %v327_v20  ;;  %v454_v32 = vmax.f32 %v436_v24, 0.0 }
 0x191   :  { %v798_v21 = vpop.f32.mrf.mxu0 }
 0x192   :  { %v446_v22 = vadd.f32 %v798_v21, %v342_v13  ;;  %v453_v34 = vmax.f32 %v431_v28, 0.0 }
 0x193   :  { %v440_v23 = vpop.f32.mrf.mxu0 }
 0x194   :  { %v456_v25 = vmax.f32 %v446_v22, 0.0  ;;  %v441_v26 = vadd.f32 %v440_v23, %v337_v15 }
 0x196   :  { %v455_v29 = vmax.f32 %v441_v26, 0.0  ;;  %799 = vmatprep.subr.mxu1 %v456_v25 }
 0x197   :  { %800 = vmatpush3.msra.mxu1 %v456_v25 }
 0x198   :  { %801 = vmatprep.subr.mxu1 %v455_v29 }
 0x199   :  { %802 = vmatpush3.msra.mxu1 %v455_v29 }
 0x19a   :  { %803 = vmatprep.subr.mxu1 %v454_v32 }
 0x19b   :  { %804 = vmatpush3.msra.mxu1 %v454_v32 }
 0x19c   :  { %805 = vmatprep.subr.mxu1 %v453_v34 }
 0x19d   :  { %806 = vmatpush3.msra.mxu1 %v453_v34 }
 0x19e   :  { %807 = vmatprep.subr.mxu1 %v452_v37 }
 0x19f   :  { %808 = vmatpush3.msra.mxu1 %v452_v37 }
 0x1a0   :  { %809 = vmatprep.subr.mxu1 %v451_v40 }
 0x1a1   :  { %810 = vmatpush3.msra.mxu1 %v451_v40 }
 0x1a2   :  { %811 = vmatprep.subr.mxu1 %v450_v41 }
 0x1a3   :  { %812 = vmatpush3.msra.mxu1 %v450_v41 }
 0x1a4   :  { %813 = vmatprep.subr.mxu1 %v449_v42 }
 0x1a5   :  { %814 = vmatpush3.msra.mxu1 %v449_v42 }
 0x1a6   :  { %816 = vmatmul.mubr.msk.f32.vlgmr.msra.gmra.mxu1 %vm485_vm0, %v458_v43  ;;  %821 = vmatprep.subr.mxu1 %v861_v46 }
 0x1a7   :  { %818 = vmatprep.mubr.msk.f32.mxu1 %vm485_vm0, %v459_v44 }
 0x1aa   :  { %819 = vmatmul.mubr.msk.f32.gmra.mxu1 %vm485_vm0, %v460_v45 }
 0x1ab   :  { %829 = vmatprep.mubr.msk.f32.mxu1 %vm862_vm1, %v861_v46 }
 0x266   :  { %v817_v48 = vpop.f32.mrf.mxu1 }
 0x267   :  { %v570_v56 = vadd.f32 %v817_v48, %v473_v54 }
 0x268   :  { %v564_v51 = vpop.f32.mrf.mxu1 }
 0x269   :  { %v565_v60 = vadd.f32 %v564_v51, %v468_v59  ;;  %v584_v62 = vmax.f32 %v570_v56, 0.0 }
 0x26a   :  { %v820_v52 = vpop.f32.mrf.mxu1 }
 0x26b   :  { %v580_v53 = vadd.f32 %v820_v52, %v483_v47  ;;  %v583_v63 = vmax.f32 %v565_v60, 0.0 }
 0x26c   :  { %v574_v55 = vpop.f32.mrf.mxu1 }
 0x26d   :  { %v586_v57 = vmax.f32 %v580_v53, 0.0  ;;  %v575_v58 = vadd.f32 %v574_v55, %v478_v49 }
 0x26f   :  { %v585_v61 = vmax.f32 %v575_v58, 0.0  ;;  %822 = vmatpush3.msra.mxu1 %v586_v57 }
 0x270   :  { %823 = vmatprep.subr.mxu1 %v861_v46 }
 0x271   :  { %824 = vmatpush3.msra.mxu1 %v585_v61 }
 0x272   :  { %825 = vmatprep.subr.mxu1 %v861_v46 }
 0x273   :  { %826 = vmatpush3.msra.mxu1 %v584_v62 }
 0x274   :  { %827 = vmatprep.subr.mxu1 %v861_v46 }
 0x275   :  { %828 = vmatpush3.msra.mxu1 %v583_v63 }
 0x276   :  { %830 = vmatmul.mubr.msk.f32.vlgmr.msra.gmra.mxu1 %vm594_vm2, %v587_v0 }
 0x336   :  { %v664_v2 = vpop.f32.mrf.mxu1 }
 0x337   :  { %v665_v3 = vadd.f32 %v664_v2, %v592_v1 }
 0x338   :  { %v831_v4 = vpop.f32.mrf.mxu1 }
 0x339   :  { %v668_v5 = vmax.f32 %v665_v3, 0.0 }
 0x33b   :  { %v675_v7 = vmul.f32 %v673_v50, %v668_v5 }
 0x33d   :  { %v676_v8 = vrot.slane %v675_v7, 4 }
 0x33f   :  { %v677_v10 = vadd.f32 %v676_v8, %v675_v7 }
 0x341   :  { %v678_v11 = vrot.slane %v677_v10, 2 }
 0x343   :  { %v679_v13 = vadd.f32 %v678_v11, %v677_v10 }
 0x345   :  { %v680_v15 = vrot.slane %v679_v13, 1 }
 0x347   :  { %v681_v17 = vadd.f32 %v680_v15, %v679_v13 }
 0x349   :  { %v692_v18 = vadd.f32 %v691_v16, %v681_v17 }
 0x34b   :  { %693 = vst [vmem:[#allocation3] sm:$0x1] %v692_v18 }
 0x34c   :  { %849 = shalt.err (!%p846_p4)
}
 0x34d   :  { %703 = dma.vmem_to_hbm [thread:$0]  %s701_s1, 16, %s1143_s11, [#allocation4]  }
 0x34e   :  { %858 = dma.done.wait [#allocation4], 16  }
 0x34f   :  { %859 = vsyncadd [#allocation4], 4294967280 }
 0x350   :  { %707 = vsyncpa [#allocation4], 1 }

</bundles_post_ra>
